<compile_context>
chip_gen: v6e
topology: v6e:2x2x1
jax: 0.10.0
libtpu: 0.0.40
codegen_flags: <defaults>
</compile_context>

<pallas_src>
import functools

import jax
import jax.numpy as jnp
from jax.experimental import pallas as pl
from jax.experimental.pallas import tpu as pltpu


# ---------------------------------------------------------------------------
# Kernel
# ---------------------------------------------------------------------------
def _actor_kernel(state_ref, w1_ref, b1_ref, w2_ref, b2_ref, w3_ref, b3_ref,
                  out_ref):
    """Fused 3-layer MLP on one batch tile: (TB, S) -> (TB, A_pad).

    Weights are bf16 (MXU operands); biases and all elementwise math are f32.
    """
    x = state_ref[...].astype(jnp.bfloat16)

    # linear1 + relu (f32 accumulate, f32 elementwise)
    h1 = jnp.dot(x, w1_ref[...], preferred_element_type=jnp.float32)
    h1 = jnp.maximum(h1 + b1_ref[...], 0.0)

    # linear2 + relu
    h2 = jnp.dot(h1.astype(jnp.bfloat16), w2_ref[...],
                 preferred_element_type=jnp.float32)
    h2 = jnp.maximum(h2 + b2_ref[...], 0.0)

    # linear3 + sigmoid (output lanes padded to 128; padding sliced in wrapper)
    h3 = jnp.dot(h2.astype(jnp.bfloat16), w3_ref[...],
                 preferred_element_type=jnp.float32)
    out_ref[...] = jax.nn.sigmoid(h3 + b3_ref[...]).astype(out_ref.dtype)


# ---------------------------------------------------------------------------
# Wrapper
# ---------------------------------------------------------------------------
def _round_up(x, m):
    return ((x + m - 1) // m) * m


def prepare_actor_params(params, lane=128):
    """One-time prep: bf16 weights, f32 biases, hidden & action dims padded
    to 128 lanes (zero padding -> numerically exact for relu layers)."""
    w1 = params["w1"]
    w2 = params["w2"]
    w3 = params["w3"]
    state_dim, hidden_dim = w1.shape
    _, action_dim = w3.shape

    h_pad = max(_round_up(hidden_dim, lane), lane)
    a_pad = max(_round_up(action_dim, lane), lane)

    w1_p = jnp.zeros((state_dim, h_pad), jnp.float32).at[:, :hidden_dim].set(w1)
    b1_p = jnp.zeros((1, h_pad), jnp.float32).at[:, :hidden_dim].set(params["b1"])
    w2_p = jnp.zeros((h_pad, h_pad), jnp.float32).at[:hidden_dim, :hidden_dim].set(w2)
    b2_p = jnp.zeros((1, h_pad), jnp.float32).at[:, :hidden_dim].set(params["b2"])
    w3_p = jnp.zeros((h_pad, a_pad), jnp.float32).at[:hidden_dim, :action_dim].set(w3)
    b3_p = jnp.zeros((1, a_pad), jnp.float32).at[:, :action_dim].set(params["b3"])

    return {
        "w1": w1_p.astype(jnp.bfloat16),
        "b1": b1_p,
        "w2": w2_p.astype(jnp.bfloat16),
        "b2": b2_p,
        "w3": w3_p.astype(jnp.bfloat16),
        "b3": b3_p,
        "action_dim": int(action_dim),   # static metadata
    }


@functools.partial(jax.jit, static_argnames=("action_dim", "max_block_b"))
def _actor_forward_impl(state, w1, b1, w2, b2, w3, b3, *, action_dim,
                        max_block_b=512):
    B, S = state.shape
    a_pad = w3.shape[1]

    # Batch tile: sublane-aligned (>=8), capped at max_block_b rows.
    tb = min(max_block_b, _round_up(max(B, 1), 8))
    b_pad = _round_up(B, tb)
    if b_pad != B:
        state = jnp.pad(state, ((0, b_pad - B), (0, 0)))

    grid = (b_pad // tb,)

    # Constant index_map -> operand stays VMEM-resident across grid steps.
    def const_spec(a):
        nd = a.ndim
        return pl.BlockSpec(a.shape, lambda i, _nd=nd: (0,) * _nd)

    out = pl.pallas_call(
        _actor_kernel,
        out_shape=jax.ShapeDtypeStruct((b_pad, a_pad), jnp.float32),
        grid=grid,
        in_specs=[
            pl.BlockSpec((tb, S), lambda i: (i, 0)),   # streamed batch tiles
            const_spec(w1), const_spec(b1),
            const_spec(w2), const_spec(b2),
            const_spec(w3), const_spec(b3),
        ],
        out_specs=pl.BlockSpec((tb, a_pad), lambda i: (i, 0)),
        compiler_params=pltpu.CompilerParams(
            dimension_semantics=("parallel",)),
    )(state, w1, b1, w2, b2, w3, b3)

    return out[:B, :action_dim]


def actor_forward(state, prepped):
    """Run the fused Actor MLP on TPU. `prepped` comes from prepare_actor_params."""
    return _actor_forward_impl(
        state,
        prepped["w1"], prepped["b1"],
        prepped["w2"], prepped["b2"],
        prepped["w3"], prepped["b3"],
        action_dim=prepped["action_dim"],
    )


# ---------------------------------------------------------------------------
# Init (mirrors nn.Linear defaults + the custom layer-3 init) and reference
# ---------------------------------------------------------------------------
def init_actor_params(key, state_dim, action_dim, hidden_dim=64, init_w=0.003):
    k1, k2, k3, k4, k5, k6 = jax.random.split(key, 6)

    def uniform(k, shape, bound):
        return jax.random.uniform(k, shape, jnp.float32, -bound, bound)

    b1_bound = 1.0 / jnp.sqrt(state_dim)
    b2_bound = 1.0 / jnp.sqrt(hidden_dim)
    return {
        "w1": uniform(k1, (state_dim, hidden_dim), b1_bound),
        "b1": uniform(k2, (1, hidden_dim), b1_bound),
        "w2": uniform(k3, (hidden_dim, hidden_dim), b2_bound),
        "b2": uniform(k4, (1, hidden_dim), b2_bound),
        "w3": uniform(k5, (hidden_dim, action_dim), init_w),
        "b3": uniform(k6, (1, action_dim), init_w),
    }


def actor_ref(state, params):
    """Pure-JAX f32 reference for correctness checking."""
    x = jnp.maximum(state @ params["w1"] + params["b1"], 0.0)
    x = jnp.maximum(x @ params["w2"] + params["b2"], 0.0)
    return jax.nn.sigmoid(x @ params["w3"] + params["b3"])


# ---------------------------------------------------------------------------
# Demo / correctness check
# ---------------------------------------------------------------------------
if __name__ == "__main__":
    state_dim, action_dim, hidden_dim = 16, 8, 64

    key = jax.random.PRNGKey(0)
    kp, kx1, kx2 = jax.random.split(key, 3)
    params = init_actor_params(kp, state_dim, action_dim, hidden_dim)
    prepped = prepare_actor_params(params)

    # Small, launch-bound case (B=4 -> padded to an 8-row tile).
    state_small = jax.random.normal(kx1, (4, state_dim), dtype=jnp.float32)
    out_small = jax.block_until_ready(actor_forward(state_small, prepped))
    ref_small = actor_ref(state_small, params)
    assert out_small.shape == (4, action_dim)
    # bf16 MXU operands vs f32 reference -> loose tolerance on sigmoid outputs.
    assert jnp.allclose(out_small, ref_small, atol=2e-2, rtol=0.0), \
        "mismatch vs JAX reference (small batch)"

    # Larger batch exercising the batch grid + padding path (grid > 1 tile).
    state_big = jax.random.normal(kx2, (300, state_dim), dtype=jnp.float32)
    out_big = jax.block_until_ready(actor_forward(state_big, prepped))
    ref_big = actor_ref(state_big, params)
    assert out_big.shape == (300, action_dim)
    assert jnp.allclose(out_big, ref_big, atol=2e-2, rtol=0.0), \
        "mismatch vs JAX reference (large batch)"

    print("KERNEL_OK")
</pallas_src>

<mosaic_0001>
module attributes {stable_mosaic.version = 11 : i64} {
  func.func @_actor_kernel(%arg0: i32, %arg1: memref<8x16xf32, #tpu.memory_space<vmem>>, %arg2: memref<16x128xbf16, #tpu.memory_space<vmem>>, %arg3: memref<1x128xf32, #tpu.memory_space<vmem>>, %arg4: memref<128x128xbf16, #tpu.memory_space<vmem>>, %arg5: memref<1x128xf32, #tpu.memory_space<vmem>>, %arg6: memref<128x128xbf16, #tpu.memory_space<vmem>>, %arg7: memref<1x128xf32, #tpu.memory_space<vmem>>, %arg8: memref<8x128xf32, #tpu.memory_space<vmem>>) attributes {dimension_semantics = [#tpu.dimension_semantics<parallel>], iteration_bounds = array<i64: 1>, scalar_prefetch = 0 : i64, scratch_operands = 0 : i64, tpu.core_type = #tpu.core_type<tc>, window_params = [{transform_indices = @transform_0, window_bounds = array<i64: 8, 16>}, {pipeline_mode = #tpu.pipeline_mode<synchronous>, transform_indices = @transform_1, window_bounds = array<i64: 16, 128>}, {pipeline_mode = #tpu.pipeline_mode<synchronous>, transform_indices = @transform_2, window_bounds = array<i64: 1, 128>}, {pipeline_mode = #tpu.pipeline_mode<synchronous>, transform_indices = @transform_3, window_bounds = array<i64: 128, 128>}, {pipeline_mode = #tpu.pipeline_mode<synchronous>, transform_indices = @transform_4, window_bounds = array<i64: 1, 128>}, {pipeline_mode = #tpu.pipeline_mode<synchronous>, transform_indices = @transform_5, window_bounds = array<i64: 128, 128>}, {pipeline_mode = #tpu.pipeline_mode<synchronous>, transform_indices = @transform_6, window_bounds = array<i64: 1, 128>}, {transform_indices = @transform_7, window_bounds = array<i64: 8, 128>}]} {
    %c0 = arith.constant 0 : index
    %c0_0 = arith.constant 0 : index
    %0 = vector.load %arg1[%c0, %c0_0] : memref<8x16xf32, #tpu.memory_space<vmem>>, vector<8x16xf32>
    %1 = arith.truncf %0 : vector<8x16xf32> to vector<8x16xbf16>
    %c0_1 = arith.constant 0 : index
    %c0_2 = arith.constant 0 : index
    %2 = vector.load %arg2[%c0_1, %c0_2] : memref<16x128xbf16, #tpu.memory_space<vmem>>, vector<16x128xbf16>
    %cst = arith.constant dense<0.000000e+00> : vector<8x128xf32>
    %3 = tpu.matmul %1, %2, %cst {dimension_numbers = #tpu.dot_dimension_numbers<[1], [0], [0], [1], [0, 0, 1, 1], [], []>} : vector<8x16xbf16>, vector<16x128xbf16>, vector<8x128xf32> -> vector<8x128xf32>
    %c0_3 = arith.constant 0 : index
    %c0_4 = arith.constant 0 : index
    %4 = vector.load %arg3[%c0_3, %c0_4] : memref<1x128xf32, #tpu.memory_space<vmem>>, vector<1x128xf32>
    %5 = vector.broadcast %4 : vector<1x128xf32> to vector<8x128xf32>
    %6 = arith.addf %3, %5 : vector<8x128xf32>
    %cst_5 = arith.constant 0.000000e+00 : f32
    %7 = vector.broadcast %cst_5 : f32 to vector<8x128xf32>
    %8 = arith.maximumf %6, %7 : vector<8x128xf32>
    %9 = arith.truncf %8 : vector<8x128xf32> to vector<8x128xbf16>
    %c0_6 = arith.constant 0 : index
    %c0_7 = arith.constant 0 : index
    %10 = vector.load %arg4[%c0_6, %c0_7] : memref<128x128xbf16, #tpu.memory_space<vmem>>, vector<128x128xbf16>
    %cst_8 = arith.constant dense<0.000000e+00> : vector<8x128xf32>
    %11 = tpu.matmul %9, %10, %cst_8 {dimension_numbers = #tpu.dot_dimension_numbers<[1], [0], [0], [1], [0, 0, 1, 1], [], []>} : vector<8x128xbf16>, vector<128x128xbf16>, vector<8x128xf32> -> vector<8x128xf32>
    %c0_9 = arith.constant 0 : index
    %c0_10 = arith.constant 0 : index
    %12 = vector.load %arg5[%c0_9, %c0_10] : memref<1x128xf32, #tpu.memory_space<vmem>>, vector<1x128xf32>
    %13 = vector.broadcast %12 : vector<1x128xf32> to vector<8x128xf32>
    %14 = arith.addf %11, %13 : vector<8x128xf32>
    %cst_11 = arith.constant 0.000000e+00 : f32
    %15 = vector.broadcast %cst_11 : f32 to vector<8x128xf32>
    %16 = arith.maximumf %14, %15 : vector<8x128xf32>
    %17 = arith.truncf %16 : vector<8x128xf32> to vector<8x128xbf16>
    %c0_12 = arith.constant 0 : index
    %c0_13 = arith.constant 0 : index
    %18 = vector.load %arg6[%c0_12, %c0_13] : memref<128x128xbf16, #tpu.memory_space<vmem>>, vector<128x128xbf16>
    %cst_14 = arith.constant dense<0.000000e+00> : vector<8x128xf32>
    %19 = tpu.matmul %17, %18, %cst_14 {dimension_numbers = #tpu.dot_dimension_numbers<[1], [0], [0], [1], [0, 0, 1, 1], [], []>} : vector<8x128xbf16>, vector<128x128xbf16>, vector<8x128xf32> -> vector<8x128xf32>
    %c0_15 = arith.constant 0 : index
    %c0_16 = arith.constant 0 : index
    %20 = vector.load %arg7[%c0_15, %c0_16] : memref<1x128xf32, #tpu.memory_space<vmem>>, vector<1x128xf32>
    %21 = vector.broadcast %20 : vector<1x128xf32> to vector<8x128xf32>
    %22 = arith.addf %19, %21 : vector<8x128xf32>
    %23 = arith.negf %22 : vector<8x128xf32>
    %24 = math.exp %23 : vector<8x128xf32>
    %cst_17 = arith.constant 1.000000e+00 : f32
    %25 = vector.broadcast %cst_17 : f32 to vector<8x128xf32>
    %26 = arith.addf %25, %24 : vector<8x128xf32>
    %27 = arith.divf %25, %26 : vector<8x128xf32>
    %c0_18 = arith.constant 0 : index
    %c0_19 = arith.constant 0 : index
    %28 = vector.load %arg8[%c0_18, %c0_19] : memref<8x128xf32, #tpu.memory_space<vmem>>, vector<8x128xf32>
    tpu.vector_store %arg8[%c0_18, %c0_19], %27 {strides = array<i32>} : memref<8x128xf32, #tpu.memory_space<vmem>>, vector<8x128xf32>,
    return
  }
  func.func @transform_0(%arg0: i32) -> (i32, i32) {
    %c0_i32 = arith.constant 0 : i32
    %c0_i32_0 = arith.constant 0 : i32
    return %arg0, %c0_i32 : i32, i32
  }
  func.func @transform_1(%arg0: i32) -> (i32, i32) {
    %c0_i32 = arith.constant 0 : i32
    %c0_i32_0 = arith.constant 0 : i32
    %c0_i32_1 = arith.constant 0 : i32
    return %c0_i32, %c0_i32_0 : i32, i32
  }
  func.func @transform_2(%arg0: i32) -> (i32, i32) {
    %c0_i32 = arith.constant 0 : i32
    %c0_i32_0 = arith.constant 0 : i32
    %c0_i32_1 = arith.constant 0 : i32
    return %c0_i32, %c0_i32_0 : i32, i32
  }
  func.func @transform_3(%arg0: i32) -> (i32, i32) {
    %c0_i32 = arith.constant 0 : i32
    %c0_i32_0 = arith.constant 0 : i32
    %c0_i32_1 = arith.constant 0 : i32
    return %c0_i32, %c0_i32_0 : i32, i32
  }
  func.func @transform_4(%arg0: i32) -> (i32, i32) {
    %c0_i32 = arith.constant 0 : i32
    %c0_i32_0 = arith.constant 0 : i32
    %c0_i32_1 = arith.constant 0 : i32
    return %c0_i32, %c0_i32_0 : i32, i32
  }
  func.func @transform_5(%arg0: i32) -> (i32, i32) {
    %c0_i32 = arith.constant 0 : i32
    %c0_i32_0 = arith.constant 0 : i32
    %c0_i32_1 = arith.constant 0 : i32
    return %c0_i32, %c0_i32_0 : i32, i32
  }
  func.func @transform_6(%arg0: i32) -> (i32, i32) {
    %c0_i32 = arith.constant 0 : i32
    %c0_i32_0 = arith.constant 0 : i32
    %c0_i32_1 = arith.constant 0 : i32
    return %c0_i32, %c0_i32_0 : i32, i32
  }
  func.func @transform_7(%arg0: i32) -> (i32, i32) {
    %c0_i32 = arith.constant 0 : i32
    %c0_i32_0 = arith.constant 0 : i32
    return %arg0, %c0_i32 : i32, i32
  }
}

</mosaic_0001>

<bundles_post_ra>
// kernel: _actor_forward_impl.1
= control target key start
LH: loop header
LB: loop body
LE: loop exit
PB: predicated region body
PF: predicated region fallthrough
CT: control target
= control target key end

     0   :  { %12 = vsyncpa [#allocation3], 0  ;;  %s604_s0 = inlined_call_operand.vmem [shape: f32[8,16], index: 0, kind: input, shape index: {}]   ;;  %s605_s1 = inlined_call_operand.vmem [shape: bf16[16,128], index: 1, kind: input, shape index: {}]   ;;  %s606_s2 = inlined_call_operand.vmem [shape: f32[1,128], index: 2, kind: input, shape index: {}]   ;;  %s607_s3 = inlined_call_operand.hbm [shape: bf16[128,128], index: 3, kind: input, shape index: {}]   ;;  %s608_s4 = inlined_call_operand.vmem [shape: f32[1,128], index: 4, kind: input, shape index: {}]   ;;  %s609_s5 = inlined_call_operand.hbm [shape: bf16[128,128], index: 5, kind: input, shape index: {}]   ;;  %s610_s6 = inlined_call_operand.vmem [shape: f32[1,128], index: 6, kind: input, shape index: {}]   ;;  %s611_s7 = inlined_call_operand.vmem [shape: f32[8,128], index: 7, kind: output, shape index: {}]  }
   0x1   :  { %13 = vsyncpa [#allocation5], 0  ;;  %s514_s24 = smov [#allocation2]  }
   0x2   :  { %s25_s25 = sshll.u32 %s514_s24, 4  ;;  %s26_s25 = int_to_ptr.vmem [resolvable:$true] %s25_s25 }
   0x3   :  { %s478_s26 = scalar_lea.vmem %s26_s25, 1024  ;;  %p483_p1 = scmp.lt.s32.totalorder %s26_s25, %s26_s25 }
   0x4   :  { %p479_p0 = scmp.ne.s32.totalorder %s26_s25, %s478_s26  ;;  %p484_p2 = scmp.lt.s32.totalorder %s478_s26, %s478_s26 }
   0x6   :  { %p485_p3 = por %p484_p2, %p483_p1 }
   0x8   :  { %p486_p4 = pnand %p485_p3, %p479_p0 }
   0xa   :  { %489 = shalt.err (!%p486_p4)
}
   0xb   :  { %s515_s27 = smov 64   ;;  %s516_s28 = smov 4  }
   0xc   :  { %31 = dma.hbm_to_vmem [thread:$0]  %s607_s3, 1024, %s26_s25, [#allocation3], %s515_s27, %s515_s27, %s516_s28  }
   0xd   :  { %s517_s8 = smov [#allocation4]  }
   0xe   :  { %s39_s9 = sshll.u32 %s517_s8, 4  ;;  %s40_s9 = int_to_ptr.vmem [resolvable:$true] %s39_s9 }
   0xf   :  { %s498_s10 = scalar_lea.vmem %s40_s9, 1024  ;;  %p503_p6 = scmp.lt.s32.totalorder %s40_s9, %s40_s9 }
  0x10   :  { %p499_p5 = scmp.ne.s32.totalorder %s40_s9, %s498_s10  ;;  %p504_p7 = scmp.lt.s32.totalorder %s498_s10, %s498_s10 }
  0x12   :  { %p505_p8 = por %p504_p7, %p503_p6 }
  0x14   :  { %p506_p9 = pnand %p505_p8, %p499_p5 }
  0x16   :  { %509 = shalt.err (!%p506_p9)
}
  0x17   :  { %45 = dma.hbm_to_vmem [thread:$0]  %s609_s5, 1024, %s40_s9, [#allocation5], %s515_s27, %s515_s27, %s516_s28  }
  0x18   :  { %510 = dma.done.wait [#allocation3], 1024  }
  0x19   :  { %511 = vsyncadd [#allocation3], 4294966272 }
  0x1a   :  { %512 = dma.done.wait [#allocation5], 1024  }
  0x1b   :  { %513 = vsyncadd [#allocation5], 4294966272  ;;  %v518_v0 = vmov 0.0   ;;  %vm519_vm0 = vmmov 0   ;;  %v449_v1 = vld [vmem:[%s605_s1] sm:$0xff]   ;;  %vm72_vm1 = vcmask 130048  }
  0x1c   :  { %397 = vmatprep.subr.bf16.mxu0 %v518_v0  ;;  %399 = vmatprep.mubr.msk.bf16.mxu0 %vm519_vm0, %v518_v0  ;;  %v55_v2 = vld [vmem:[%s604_s0] sm:$0xff]  ;;  %v450_v4 = vld [vmem:[#allocation2 + $0x38] sm:$0xff]   ;;  %v451_v5 = vld [vmem:[#allocation2 + $0x30] sm:$0xff]  }
  0x1d   :  { %403 = vmatprep.subr.bf16.mxu1 %v518_v0  ;;  %419 = vmatprep.mubr.msk.bf16.mxu1 %vm519_vm0, %v518_v0  ;;  %v56_v3 = vpack.c.bf16 %v55_v2, %v55_v2  ;;  %v452_v6 = vld [vmem:[#allocation2 + $0x28] sm:$0xff]   ;;  %v453_v7 = vld [vmem:[#allocation2 + $0x20] sm:$0xff]   ;;  %v454_v8 = vld [vmem:[#allocation2 + $0x18] sm:$0xff]  }
  0x1e   :  { %398 = vmatpush3.bf16.msra.mxu0 %v449_v1  ;;  %404 = vmatpush3.bf16.msra.mxu1 %v450_v4  ;;  %v455_v9 = vld [vmem:[#allocation2 + $0x10] sm:$0xff]   ;;  %v456_v10 = vld [vmem:[#allocation2 + $0x8] sm:$0xff]   ;;  %v457_v11 = vld [vmem:[#allocation2] sm:$0xff]  }
  0x1f   :  { %423 = vmatprep.subr.bf16.mxu0 %v518_v0  ;;  %405 = vmatprep.subr.bf16.mxu1 %v518_v0  ;;  %v458_v12 = vld [vmem:[#allocation4 + $0x38] sm:$0xff]   ;;  %v459_v13 = vld [vmem:[#allocation4 + $0x30] sm:$0xff]   ;;  %v460_v14 = vld [vmem:[#allocation4 + $0x28] sm:$0xff]  }
  0x20   :  { %v461_v15 = vld [vmem:[#allocation4 + $0x20] sm:$0xff]   ;;  %v462_v16 = vld [vmem:[#allocation4 + $0x18] sm:$0xff]   ;;  %v463_v17 = vld [vmem:[#allocation4 + $0x10] sm:$0xff]  }
  0x21   :  { %400 = vmatmul.mubr.msk.bf16.vlgmr.msra.gmra.mxu0 %vm72_vm1, %v56_v3  ;;  %v355_v18 = vld [vmem:[%s606_s2] ss:$0 sm:$0xff]  ;;  %v464_v26 = vld [vmem:[#allocation4 + $0x8] sm:$0xff]  }
  0x22   :  { %439 = vmatprep.mubr.msk.bf16.mxu0 %vm519_vm0, %v518_v0  ;;  %406 = vmatpush3.bf16.msra.mxu1 %v451_v5  ;;  %v465_v27 = vld [vmem:[#allocation4] sm:$0xff]  }
  0x23   :  { %407 = vmatprep.subr.bf16.mxu1 %v518_v0  ;;  %424 = vmatpush3.bf16.msra.mxu0 %v458_v12  ;;  %v358_v28 = vld [vmem:[%s608_s4] ss:$0 sm:$0xff] }
  0x24   :  { %425 = vmatprep.subr.bf16.mxu0 %v518_v0  ;;  %v367_v36 = vld [vmem:[%s610_s6] ss:$0 sm:$0xff] }
  0x26   :  { %408 = vmatpush3.bf16.msra.mxu1 %v452_v6 }
  0x27   :  { %409 = vmatprep.subr.bf16.mxu1 %v518_v0  ;;  %426 = vmatpush3.bf16.msra.mxu0 %v459_v13 }
  0x28   :  { %427 = vmatprep.subr.bf16.mxu0 %v518_v0 }
  0x2a   :  { %410 = vmatpush3.bf16.msra.mxu1 %v453_v7 }
  0x2b   :  { %411 = vmatprep.subr.bf16.mxu1 %v518_v0  ;;  %428 = vmatpush3.bf16.msra.mxu0 %v460_v14 }
  0x2c   :  { %429 = vmatprep.subr.bf16.mxu0 %v518_v0 }
  0x2e   :  { %412 = vmatpush3.bf16.msra.mxu1 %v454_v8 }
  0x2f   :  { %413 = vmatprep.subr.bf16.mxu1 %v518_v0  ;;  %430 = vmatpush3.bf16.msra.mxu0 %v461_v15 }
  0x30   :  { %431 = vmatprep.subr.bf16.mxu0 %v518_v0 }
  0x32   :  { %414 = vmatpush3.bf16.msra.mxu1 %v455_v9 }
  0x33   :  { %415 = vmatprep.subr.bf16.mxu1 %v518_v0  ;;  %432 = vmatpush3.bf16.msra.mxu0 %v462_v16 }
  0x34   :  { %433 = vmatprep.subr.bf16.mxu0 %v518_v0 }
  0x36   :  { %416 = vmatpush3.bf16.msra.mxu1 %v456_v10 }
  0x37   :  { %417 = vmatprep.subr.bf16.mxu1 %v518_v0  ;;  %434 = vmatpush3.bf16.msra.mxu0 %v463_v17 }
  0x38   :  { %435 = vmatprep.subr.bf16.mxu0 %v518_v0 }
  0x3a   :  { %418 = vmatpush3.bf16.msra.mxu1 %v457_v11 }
  0x3b   :  { %436 = vmatpush3.bf16.msra.mxu0 %v464_v26 }
  0x3c   :  { %437 = vmatprep.subr.bf16.mxu0 %v518_v0 }
  0x3f   :  { %438 = vmatpush3.bf16.msra.mxu0 %v465_v27 }
  0xe1   :  { %v110_v19 = vpop.f32.mrf.mxu0 }
  0xe2   :  { %v111_v20 = vadd.f32 %v355_v18, %v110_v19 }
  0xe3   :  { %v401_v21 = vpop.f32.mrf.mxu0 }
  0xe4   :  { %v116_v22 = vmax.f32 %v111_v20, 0.0 }
  0xe5   :  { %v113_v23 = vpop.f32.mrf.mxu0 }
  0xe6   :  { %v117_v24 = vpack.c.bf16 %v116_v22, %v116_v22 }
  0xe7   :  { %v402_v25 = vpop.f32.mrf.mxu0 }
  0xe8   :  { %420 = vmatmul.mubr.bf16.vlgmr.msra.gmra.mxu1 %v117_v24 }
 0x1a8   :  { %v223_v29 = vpop.f32.mrf.mxu1 }
 0x1a9   :  { %v224_v30 = vadd.f32 %v358_v28, %v223_v29 }
 0x1aa   :  { %v421_v31 = vpop.f32.mrf.mxu1 }
 0x1ab   :  { %v229_v32 = vmax.f32 %v224_v30, 0.0 }
 0x1ac   :  { %v226_v33 = vpop.f32.mrf.mxu1 }
 0x1ad   :  { %v230_v34 = vpack.c.bf16 %v229_v32, %v229_v32 }
 0x1ae   :  { %v422_v35 = vpop.f32.mrf.mxu1 }
 0x1af   :  { %440 = vmatmul.mubr.bf16.vlgmr.msra.gmra.mxu0 %v230_v34 }
 0x26f   :  { %v336_v37 = vpop.f32.mrf.mxu0 }
 0x270   :  { %v337_v38 = vadd.f32 %v367_v36, %v336_v37 }
 0x271   :  { %v441_v39 = vpop.f32.mrf.mxu0 }
 0x272   :  { %v376_v40 = vmul.f32 -1.442695, %v337_v38 }
 0x273   :  { %v339_v41 = vpop.f32.mrf.mxu0 }
 0x274   :  { %466 = vpow2.f32 %v376_v40 }
 0x275   :  { %v442_v42 = vpop.f32.mrf.mxu0 }
 0x281   :  { %v467_v43 = vpop.eup %466 }
 0x282   :  { %v345_v44 = vadd.f32 1.0, %v467_v43 }
 0x284   :  { %468 = vrcp.f32 %v345_v44 }
 0x291   :  { %v469_v45 = vpop.eup %468 }
 0x292   :  { %348 = vst [vmem:[%s611_s7] sm:$0xff] %v469_v45 }
 0x293   :  { %353 = vsyncpa [#allocation3], 1 }
 0x294   :  { %354 = vsyncpa [#allocation5], 1 }

</bundles_post_ra>
